<compile_context>
chip_gen: v5e
topology: v5e:2x2
jax: 0.10.0
libtpu: 0.0.40
codegen_flags: <defaults>
</compile_context>

<pallas_src>
import functools
import math

import jax
import jax.numpy as jnp
from jax.experimental import pallas as pl
from jax.experimental.pallas import tpu as pltpu


_LANES = 128      # lane-dense last dim (full vreg width -> unmasked vst)
_ROW_ALIGN = 32   # sublane alignment that is safe for f32 / bf16 / int8 packing


def _default_tile_bytes():
    """Per-generation tile target: big tiles amortize the ~0.35 us/step overhead."""
    try:
        kind = jax.devices()[0].device_kind.lower()
    except Exception:
        kind = ""
    if "v7" in kind:
        return 4 << 20            # 4 MiB: needed to keep up with ~3.2 TB/s HBM
    if "v6" in kind:
        return 2 << 20            # 2 MiB
    if "v5 lite" in kind or "v5e" in kind or "v5litepod" in kind:
        return 3 << 19            # 1.5 MiB: stay under v5e's 16 MiB scoped VMEM
    return 2 << 20


def make_pe(max_len, d_model, dtype=jnp.float32):
    """Deterministic sinusoidal positional-encoding buffer (matches torch init)."""
    position = jnp.arange(max_len, dtype=jnp.float32)[:, None]
    div_term = jnp.exp(
        jnp.arange(0, d_model, 2, dtype=jnp.float32) * (-(math.log(10000.0) / d_model))
    )
    ang = position * div_term                      # (max_len, d_model // 2)
    pe = jnp.zeros((max_len, d_model), jnp.float32)
    pe = pe.at[:, 0::2].set(jnp.sin(ang))
    pe = pe.at[:, 1::2].set(jnp.cos(ang))
    return pe.astype(dtype)


def _posenc_kernel(x_ref, pe_ref, o_ref):
    # x_ref/o_ref: (1, block_rows, cols); pe_ref: (block_rows, cols), already x.dtype.
    o_ref[0] = (x_ref[0] + pe_ref[...]).astype(o_ref.dtype)


def _posenc_dropout_kernel(x_ref, pe_ref, bits_ref, o_ref, *, drop_threshold, inv_keep):
    y = x_ref[0] + pe_ref[...]
    # Inverted dropout; drop iff bits < p * 2**32 (pure integer compare).
    keep = bits_ref[0] >= jnp.uint32(drop_threshold)
    o_ref[0] = jnp.where(keep, y * inv_keep, jnp.zeros_like(y)).astype(o_ref.dtype)


def positional_encoding(x, pe, *, p=0.1, training=False, rng=None, tile_bytes=None):
    """dropout(x + pe[:S]) for x of shape (B, S, D); pe is the (max_len, D) buffer."""
    B, S, D = x.shape
    dtype = x.dtype
    flat = S * D

    apply_dropout = bool(training) and float(p) > 0.0
    if apply_dropout and float(p) >= 1.0:
        # nn.Dropout(p=1) zeroes everything in training; avoid 1/(1-p) blow-up.
        return jnp.zeros_like(x)

    # Layout: lane-dense flattening when it is a free reshape; otherwise tile the
    # natural (B, S, D) array with full-D blocks (no padded copies either way).
    lane_dense = (flat % _LANES == 0)
    if lane_dense:
        rows, cols = flat // _LANES, _LANES
        x3 = x.reshape(B, rows, cols)                       # contiguous, no HBM copy
        # NOTE: pe2 depends only on (S, dtype); cache it across calls if reused.
        pe2 = pe[:S].astype(dtype).reshape(rows, cols)      # cast once, outside kernel
    else:
        rows, cols = S, D
        x3 = x
        pe2 = pe[:S].astype(dtype)
    # TODO(synk): for bf16 x the add happens in bf16 (torch adds an f32 pe buffer).

    itemsize = jnp.dtype(dtype).itemsize
    target = int(tile_bytes) if tile_bytes else _default_tile_bytes()
    br = (target // (cols * itemsize)) // _ROW_ALIGN * _ROW_ALIGN
    br = max(br, _ROW_ALIGN)
    block_rows = rows if br >= rows else br                 # full-extent is always legal
    n_rb = pl.cdiv(rows, block_rows)

    x_spec = pl.BlockSpec((1, block_rows, cols), lambda r, b: (b, r, 0))
    pe_spec = pl.BlockSpec((block_rows, cols), lambda r, b: (r, 0))
    out_spec = pl.BlockSpec((1, block_rows, cols), lambda r, b: (b, r, 0))

    if apply_dropout:
        if rng is None:
            rng = jax.random.PRNGKey(0)
        # TODO(synk): dropout mask comes from JAX's PRNG, not bit-identical to torch.
        bits = jax.random.bits(rng, (B, rows, cols), dtype=jnp.uint32)
        thr = min(int(round(float(p) * 2.0 ** 32)), 2 ** 32 - 1)
        kernel = functools.partial(
            _posenc_dropout_kernel,
            drop_threshold=thr,
            inv_keep=float(1.0 / (1.0 - float(p))),
        )
        in_specs = [x_spec, pe_spec,
                    pl.BlockSpec((1, block_rows, cols), lambda r, b: (b, r, 0))]
        args = (x3, pe2, bits)
    else:
        kernel = _posenc_kernel
        in_specs = [x_spec, pe_spec]
        args = (x3, pe2)

    out = pl.pallas_call(
        kernel,
        out_shape=jax.ShapeDtypeStruct((B, rows, cols), dtype),
        grid_spec=pltpu.PrefetchScalarGridSpec(
            num_scalar_prefetch=0,
            # Batch is the innermost grid axis: pe's block index is constant across
            # consecutive steps, so its tile stays resident in VMEM (fetched once per
            # row-block instead of once per (row-block, batch) step).
            grid=(n_rb, B),
            in_specs=in_specs,
            out_specs=out_spec,
        ),
        compiler_params=pltpu.CompilerParams(
            # Pure elementwise, no accumulator: both axes can shard across TCs (v7x).
            dimension_semantics=("parallel", "parallel"),
        ),
    )(*args)

    return out.reshape(B, S, D)


if __name__ == "__main__":
    B, S, D = 2, 8, 32            # batch=2, seq=8, d_model=32 (small demo shapes)
    key = jax.random.PRNGKey(0)
    x = jax.random.normal(key, (B, S, D), dtype=jnp.float32)

    pe = make_pe(max_len=5000, d_model=D)
    ref = x + pe[:S][None, :, :]

    # eval-mode forward (dropout is identity, as in nn.Dropout.eval())
    out = positional_encoding(x, pe, p=0.2, training=False)
    jax.block_until_ready(out)
    assert out.shape == (B, S, D) and out.dtype == x.dtype
    assert jnp.allclose(out, ref, atol=1e-6, rtol=1e-6), "mismatch vs reference"

    # training-mode forward: exercise the dropout path (bits generated host-side).
    p = 0.2
    out_tr = positional_encoding(x, pe, p=p, training=True,
                                 rng=jax.random.PRNGKey(123))
    jax.block_until_ready(out_tr)
    assert out_tr.shape == (B, S, D)
    scaled = ref / (1.0 - p)
    ok = jnp.isclose(out_tr, 0.0, atol=1e-6) | jnp.isclose(out_tr, scaled,
                                                           atol=1e-5, rtol=1e-5)
    assert bool(jnp.all(ok)), "dropout output must be 0 or (x+pe)/(1-p)"

    print("KERNEL_OK")
</pallas_src>

<mosaic_0001>
module attributes {stable_mosaic.version = 11 : i64} {
  func.func @_posenc_kernel(%arg0: i32, %arg1: i32, %arg2: memref<1x2x128xf32, #tpu.memory_space<vmem>>, %arg3: memref<2x128xf32, #tpu.memory_space<vmem>>, %arg4: memref<1x2x128xf32, #tpu.memory_space<vmem>>) attributes {dimension_semantics = [#tpu.dimension_semantics<parallel>, #tpu.dimension_semantics<parallel>], iteration_bounds = array<i64: 1, 2>, scalar_prefetch = 0 : i64, scratch_operands = 0 : i64, tpu.core_type = #tpu.core_type<tc>, window_params = [{transform_indices = @transform_0, window_bounds = array<i64: 1, 2, 128>}, {transform_indices = @transform_1, window_bounds = array<i64: 2, 128>}, {transform_indices = @transform_2, window_bounds = array<i64: 1, 2, 128>}]} {
    %c0 = arith.constant 0 : index
    %c0_0 = arith.constant 0 : index
    %c0_1 = arith.constant 0 : index
    %0 = vector.load %arg2[%c0, %c0_0, %c0_1] : memref<1x2x128xf32, #tpu.memory_space<vmem>>, vector<1x2x128xf32>
    %1 = vector.shape_cast %0 : vector<1x2x128xf32> to vector<2x128xf32>
    %c0_2 = arith.constant 0 : index
    %c0_3 = arith.constant 0 : index
    %2 = vector.load %arg3[%c0_2, %c0_3] : memref<2x128xf32, #tpu.memory_space<vmem>>, vector<2x128xf32>
    %3 = arith.addf %1, %2 : vector<2x128xf32>
    %c0_4 = arith.constant 0 : index
    %c0_5 = arith.constant 0 : index
    %c0_6 = arith.constant 0 : index
    %4 = vector.load %arg4[%c0_4, %c0_5, %c0_6] : memref<1x2x128xf32, #tpu.memory_space<vmem>>, vector<1x2x128xf32>
    %5 = vector.shape_cast %4 : vector<1x2x128xf32> to vector<2x128xf32>
    %6 = vector.shape_cast %3 : vector<2x128xf32> to vector<1x2x128xf32>
    tpu.vector_store %arg4[%c0_4, %c0_5, %c0_6], %6 {strides = array<i32>} : memref<1x2x128xf32, #tpu.memory_space<vmem>>, vector<1x2x128xf32>,
    return
  }
  func.func @transform_0(%arg0: i32, %arg1: i32) -> (i32, i32, i32) {
    %c0_i32 = arith.constant 0 : i32
    %c0_i32_0 = arith.constant 0 : i32
    return %arg1, %arg0, %c0_i32 : i32, i32, i32
  }
  func.func @transform_1(%arg0: i32, %arg1: i32) -> (i32, i32) {
    %c0_i32 = arith.constant 0 : i32
    %c0_i32_0 = arith.constant 0 : i32
    return %arg0, %c0_i32 : i32, i32
  }
  func.func @transform_2(%arg0: i32, %arg1: i32) -> (i32, i32, i32) {
    %c0_i32 = arith.constant 0 : i32
    %c0_i32_0 = arith.constant 0 : i32
    return %arg1, %arg0, %c0_i32 : i32, i32, i32
  }
}

</mosaic_0001>

<bundles_post_ra>
// kernel: tpu_custom_call.1
= control target key start
LH: loop header
LB: loop body
LE: loop exit
PB: predicated region body
PF: predicated region fallthrough
CT: control target
= control target key end

     0   :  { %7 = vsyncpa [#allocation3], 0  ;;  %s714_s0 = inlined_call_operand.hbm [shape: f32[2,2,128], index: 0, kind: input, shape index: {}]   ;;  %s715_s1 = inlined_call_operand.hbm [shape: f32[2,128], index: 1, kind: input, shape index: {}]   ;;  %s716_s2 = inlined_call_operand.hbm [shape: f32[2,2,128], index: 2, kind: output, shape index: {}]  }
   0x1   :  { %9 = vsyncpa [#allocation3 + $0x1], 0 }
   0x2   :  { %10 = vsyncpa [#allocation6], 0 }
   0x3   :  { %11 = vsyncpa [#allocation4], 0 }
   0x4   :  { %13 = vsyncpa [#allocation4 + $0x1], 0  ;;  %s565_s9 = smov 0   ;;  %s567_s10 = smov 0  }
   0x5   :  { %s569_s11 = smov 0   ;;  %s571_s12 = smov 0  }
   0x6   :  { %s573_s13 = smov 0   ;;  %s575_s14 = smov 0  }
   0x7 LB: > { %s313_s15 = sadd.s32 4294967295, %s547_s14   ;;  %s314_s16 = sadd.s32 4294967294, %s547_s14   ;;  %s547_s14 = sphi %s575_s14, %s19_s14   ;;  %s543_s13 = sphi %s573_s13, %s728_s13   ;;  %s539_s12 = sphi %s571_s12, %s727_s12   ;;  %s535_s11 = sphi %s569_s11, %s726_s11   ;;  %s531_s10 = sphi %s567_s10, %s725_s10   ;;  %s527_s9 = sphi %s565_s9, %s724_s9  }
   0x8   : > { %p53_p0 = scmp.ne.s32.totalorder %s531_s10, %s527_s9  ;;  %p599_p1 = scmp.eq.s32.totalorder %s313_s15, 0 }
   0x9   : > { %p603_p2 = scmp.eq.s32.totalorder %s313_s15, 1  ;;  %p111_p3 = scmp.eq.s32.totalorder %s314_s16, 1 }
   0xa   : > { %p609_p4 = por %p599_p1, %p53_p0  ;;  %p315_p5 = scmp.ge.s32.totalorder %s547_s14, 1 }
   0xb   : > { %p614_p6 = por %p111_p3, %p53_p0  ;;  %p118_p7 = scmp.lt.s32.totalorder %s547_s14, 3 }
   0xc   : > { %s132_s23 = sshll.u32 %s715_s1, 4  ;;  %p317_p9 = scmp.ge.s32.totalorder %s547_s14, 2  ;;  %s133_s23 = int_to_ptr.hbm [resolvable:$true] %s132_s23 }
   0xd   : > { %p622_p8 = pnand %p315_p5, %p118_p7  ;;  %s549_s25 = smov [#allocation5]  }
   0xe   : > { %s134_s26 = sshll.u32 %s549_s25, 4  ;;  %s28_s27 = sadd.s32 1, %s543_s13  ;;  %s135_s26 = int_to_ptr.vmem [resolvable:$true] %s134_s26 }
   0xf   : > { %p336_p10 = pneg %p622_p8  ;;  %p29_p12 = scmp.ge.s32.totalorder %s28_s27, 2 }
  0x10   : > { %s40_s28 = sadd.s32 1, %s535_s11  ;;  %p47_p13 = scmp.ne.s32.totalorder %s535_s11, %s531_s10 }
  0x11   : > { %p337_p11 = pnand %p336_p10, %p599_p1  ;;  %p48_p0 = scmp.eq.s32.totalorder %s547_s14, 0 }
  0x12   : > { %s730_s27 = smov (%p29_p12, %s28_s27), 0  ;;  %p644_p5 = por %p603_p2, %p47_p13 }
  0x13   : > { %339 = dma.hbm_to_vmem [thread:$0]  (!%p337_p11), %s133_s23, 32, %s135_s26, [#allocation6]  }
  0x14   : > { %p638_p3 = por %p48_p0, %p47_p13  ;;  %s35_s3 = ssub.s32 %s543_s13, %s730_s27 }
  0x15   : > { %p349_p7 = scmp.lt.s32.totalorder %s547_s14, 2  ;;  %p38_p10 = scmp.eq.s32.totalorder %s35_s3, 0 }
  0x16   : > { %s145_s4 = sand.u32 1, %s535_s11   ;;  %s319_s7 = sshll.u32 %s543_s13, 1 }
  0x17   : > { %s318_s5 = sshll.u32 %s145_s4, 1  ;;  %s154_s16 = scalar_lea.hbm %s714_s0, %s319_s7 }
  0x18   : > { %s653_s6 = scalar_select %p38_p10, %s535_s11, %s40_s28  }
  0x19   : > { %s149_s21 = scalar_lea.vmem [#allocation2], %s318_s5  ;;  %s156_s18 = sshll.u32 %s154_s16, 4  ;;  %s157_s18 = int_to_ptr.hbm [resolvable:$true] %s156_s18 }
  0x1a   : > { %s158_s22 = sshll.u32 %s149_s21, 4  ;;  %p341_p2 = pnand %p349_p7, %p638_p3  ;;  %s159_s22 = int_to_ptr.vmem [resolvable:$true] %s158_s22 }
  0x1b   : > { %s146_s23 = scalar_lea.sflag [#allocation3], %s145_s4  ;;  %167 = sbr.rel (%p622_p8) target bundleno = 50 (0x32), region = 28 }
  0x1c   : > { %343 = dma.hbm_to_vmem [thread:$0]  (!%p341_p2), %s157_s18, 32, %s159_s22, %s146_s23  }
  0x1d   : > { %s664_s25 = sand.u32 (!%p622_p8), 1, %s531_s10  }
  0x1e   : > { %s321_s26 = sshll.u32 (!%p622_p8), %s664_s25, 1  ;;  %s170_s28 = scalar_lea.sflag (!%p622_p8), [#allocation3], %s664_s25 }
  0x1f   : > { %s173_s3 = scalar_lea.vmem (!%p622_p8), [#allocation2], %s321_s26 }
  0x20   : > { %514 = dma.done.wait (%p609_p4), %s170_s28, 32  }
  0x21   : > { %516 = vsyncadd (%p609_p4), %s170_s28, 4294967264 }
  0x22   : > { %518 = dma.done.wait (%p599_p1), [#allocation6], 32  }
  0x23   : > { %520 = vsyncadd (%p599_p1), [#allocation6], 4294967264  ;;  %s325_s24 = sshll.u32 %s539_s12, 1  ;;  %s199_s7 = scalar_lea.vmem [#allocation7], %s321_s26  ;;  %v200_v0 = vld [vmem:[%s173_s3] sm:$0x3] }
  0x24   : > { %s216_s5 = scalar_lea.hbm %s716_s2, %s325_s24  ;;  %s218_s8 = sshll.u32 %s199_s7, 4  ;;  %v201_v1 = vld [vmem:[#allocation5] sm:$0x3]  ;;  %s219_s8 = int_to_ptr.vmem [resolvable:$true] %s218_s8 }
  0x25   : > { %s220_s15 = sshll.u32 %s216_s5, 4  ;;  %v202_v2 = vadd.f32 %v201_v1, %v200_v0  ;;  %s205_s19 = scalar_lea.sflag [#allocation4], %s664_s25  ;;  %s221_s15 = int_to_ptr.hbm [resolvable:$true] %s220_s15 }
  0x26   : > { %s475_s17 = sshra.s32 %s221_s15, 4  ;;  %s481_s22 = scalar_lea.hbm %s716_s2, 4  ;;  %s476_s17 = int_to_ptr.hbm [resolvable:$true] %s475_s17 }
  0x27   : > { %203 = vst [vmem:[%s199_s7] sm:$0x3] %v202_v2  ;;  %s477_s16 = scalar_lea.hbm %s476_s17, 2  ;;  %p482_p11 = scmp.lt.s32.totalorder %s476_s17, %s716_s2 }
  0x28   : > { %p478_p1 = scmp.ne.s32.totalorder %s476_s17, %s477_s16  ;;  %p483_p12 = scmp.lt.s32.totalorder %s481_s22, %s477_s16 }
  0x2a   : > { %p479_p4 = pnand %p478_p1, %p644_p5  ;;  %p484_p13 = por %p483_p12, %p482_p11 }
  0x2c   : > { %p480_p8 = pneg %p479_p4 }
  0x2e   : > { %p485_p0 = pnand %p484_p13, %p480_p8 }
  0x30   : > { %488 = shalt.err (!%p485_p0)
}
  0x31   : > { %334 = dma.vmem_to_hbm [thread:$0]  (%p644_p5), %s219_s8, 32, %s221_s15, %s205_s19  }
  0x32 PF: > { %s232_s25 = sand.u32 1, %s527_s9   ;;  %p345_p3 = pnand %p317_p9, %p614_p6 }
  0x33   : > { %s233_s26 = scalar_lea.sflag [#allocation4], %s232_s25 }
  0x34   : > { %p346_p7 = pneg %p345_p3 }
  0x36   : > { %522 = dma.done.wait (%p346_p7), %s233_s26, 32  }
  0x37   : > { %524 = vsyncadd (%p346_p7), %s233_s26, 4294967264  ;;  %s19_s14 = sadd.s32 1, %s547_s14   ;;  %s724_s9 = smov %s531_s10 }
  0x38   : > { %p16_p10 = scmp.ge.s32.totalorder %s19_s14, 4   ;;  %s725_s10 = smov %s535_s11 }
  0x39   : > { %s726_s11 = smov %s653_s6  ;;  %s727_s12 = smov %s543_s13 }
  0x3a   : > { %s728_s13 = smov %s730_s27  ;;  %18 = sbr.rel (!%p16_p10) target bundleno = 7 (0x7), region = 78 }
  0x3f   :  { %239 = vsyncpa [#allocation3], 1 }
  0x40   :  { %241 = vsyncpa [#allocation3 + $0x1], 1 }
  0x41   :  { %242 = vsyncpa [#allocation6], 1 }
  0x42   :  { %243 = vsyncpa [#allocation4], 1 }
  0x43   :  { %245 = vsyncpa [#allocation4 + $0x1], 1 }

</bundles_post_ra>
